<compile_context>
chip_gen: v5e
topology: v5e:2x2
jax: 0.10.0
libtpu: 0.0.40
codegen_flags: <defaults>
</compile_context>

<pallas_src>
import functools
import math

import jax
import jax.numpy as jnp
from jax.experimental import pallas as pl
from jax.experimental.pallas import tpu as pltpu


def _layernorm_kernel(x_ref, alpha_ref, bias_ref, o_ref, *, eps, features, groups):
    # x_ref: (row_tile, groups*features) block in VMEM; alpha/bias: (1, width) f32.
    # Each lane row packs `groups` independent logical rows (segments of length
    # `features`).  All reductions are strictly per segment, so garbage rows in
    # a ragged (masked) tail block never contaminate real rows.
    x = x_ref[...].astype(jnp.float32)
    segs = []
    for j in range(groups):  # static unroll; groups <= 16
        xs = x[:, j * features:(j + 1) * features]
        mean = jnp.mean(xs, axis=-1, keepdims=True)
        centered = xs - mean
        # torch.std default: unbiased estimator (divides by N-1).
        var = jnp.sum(centered * centered, axis=-1, keepdims=True) * (
            1.0 / (features - 1))
        std = jnp.sqrt(var)
        inv = pl.reciprocal(std + eps, approx=False)  # approx=True would break 1e-5 tol
        segs.append(centered * inv)
    normed = segs[0] if groups == 1 else jnp.concatenate(segs, axis=-1)
    o_ref[...] = (alpha_ref[...] * normed + bias_ref[...]).astype(o_ref.dtype)


def _sublane_pack(dtype):
    # rows-per-vreg-sublane pack: 8 for f32, 16 for bf16, 32 for int8/fp8.
    itemsize = jnp.dtype(dtype).itemsize
    return 8 * max(1, 4 // itemsize)


def _lane_padded(width):
    return ((width + 127) // 128) * 128


def _choose_row_tile(rows, width, dtype, vmem_bytes):
    """Biggest row tile such that each pipeline slab is a multi-MiB DMA
    (measured to sit on the flat part of the HBM roofline) while the whole
    pipeline (2x in + 2x out + f32 temporaries) stays well inside VMEM even
    on v7x (64 MiB/TC)."""
    itemsize = jnp.dtype(dtype).itemsize
    # f32 intermediates dominate in-kernel even if the input is bf16/fp8.
    row_bytes = _lane_padded(width) * max(itemsize, 4)
    # ~4 MiB per slab; scale down on hypothetical small-VMEM parts.
    per_buffer = min(4 * 1024 * 1024, max(vmem_bytes // 16, 512 * 1024))
    rt = per_buffer // max(1, row_bytes)
    if rt >= rows:
        return rows  # single block == full array dim, always legal
    pack = _sublane_pack(dtype)
    return max(pack, (rt // pack) * pack)


def layer_norm_pallas(x, alpha, bias, eps=1e-6, row_tile=None):
    orig_shape = x.shape
    features = int(orig_shape[-1])
    if features < 2:
        raise ValueError(
            "LayerNormalization needs features >= 2: torch.std's unbiased "
            "estimator is undefined for a single element.")
    rows = int(math.prod(orig_shape[:-1])) if len(orig_shape) > 1 else 1
    x2 = x.reshape(rows, features)

    # Lane packing for narrow feature dims: fold `groups` logical rows into a
    # single lane-dense row of width groups*features (zero-copy reshape).
    groups = 1
    if 8 <= features < 128 and 128 % features == 0:
        g = 128 // features
        while g > 1 and rows % g != 0:
            g //= 2
        groups = g
    width = groups * features
    rows_p = rows // groups
    if groups > 1:
        x2 = x2.reshape(rows_p, width)

    try:
        info = pltpu.get_tpu_info()
        vmem_bytes = int(getattr(info, "vmem_capacity_bytes", 64 * 1024 * 1024))
    except Exception:
        vmem_bytes = 64 * 1024 * 1024  # conservative default (v7x per-TC)

    if row_tile is None:
        row_tile = _choose_row_tile(rows_p, width, x.dtype, vmem_bytes)
    row_tile = max(1, int(min(row_tile, rows_p)))

    # alpha / bias stay resident across the grid (constant block index); tiled
    # across the packed segments and cast to f32 once in the wrapper.
    alpha_p = jnp.tile(alpha.reshape(-1).astype(jnp.float32), groups).reshape(1, width)
    bias_p = jnp.tile(bias.reshape(-1).astype(jnp.float32), groups).reshape(1, width)

    grid = (pl.cdiv(rows_p, row_tile),)
    kernel = functools.partial(
        _layernorm_kernel, eps=eps, features=features, groups=groups)

    itemsize = jnp.dtype(x.dtype).itemsize
    lp = _lane_padded(width)
    io_bytes = 4 * row_tile * lp * itemsize      # 2x input + 2x output double buffers
    tmp_bytes = 3 * row_tile * lp * 4            # f32 intermediates headroom
    param_bytes = 4 * lp * 4
    needed = io_bytes + tmp_bytes + param_bytes
    vmem_limit = int(min(vmem_bytes * 3 // 4,
                         max(32 * 1024 * 1024, needed * 5 // 4)))

    out = pl.pallas_call(
        kernel,
        out_shape=jax.ShapeDtypeStruct((rows_p, width), x.dtype),
        grid_spec=pltpu.PrefetchScalarGridSpec(
            num_scalar_prefetch=0,
            grid=grid,
            in_specs=[
                pl.BlockSpec((row_tile, width), lambda i: (i, 0)),
                pl.BlockSpec((1, width), lambda i: (0, 0)),
                pl.BlockSpec((1, width), lambda i: (0, 0)),
            ],
            out_specs=pl.BlockSpec((row_tile, width), lambda i: (i, 0)),
        ),
        compiler_params=pltpu.CompilerParams(
            dimension_semantics=("parallel",),
            vmem_limit_bytes=vmem_limit,
        ),
    )(x2, alpha_p, bias_p)

    return out.reshape(orig_shape)


def layer_norm_ref(x, alpha, bias, eps=1e-6):
    x32 = x.astype(jnp.float32)
    mean = jnp.mean(x32, axis=-1, keepdims=True)
    std = jnp.std(x32, axis=-1, keepdims=True, ddof=1)  # unbiased, like torch.std
    return (alpha * (x32 - mean) / (std + eps) + bias).astype(x.dtype)


if __name__ == "__main__":
    key = jax.random.PRNGKey(0)
    batch, seq, features = 2, 8, 32

    x = jax.random.normal(key, (batch, seq, features), dtype=jnp.float32)
    # Deterministic parameter init matching nn.Parameter(torch.ones/zeros(features))
    alpha = jnp.ones((features,), dtype=jnp.float32)
    bias = jnp.zeros((features,), dtype=jnp.float32)

    # Main (lane-packed, groups=4) path: rows=16, width=128.
    out = layer_norm_pallas(x, alpha, bias, eps=1e-6)
    out = jax.block_until_ready(out)
    ref = layer_norm_ref(x, alpha, bias, eps=1e-6)
    assert out.shape == x.shape
    assert jnp.allclose(out, ref, atol=1e-5, rtol=1e-5), "mismatch vs reference"

    # Ragged grid + reduced packing path: rows=26 -> groups=2, width=64,
    # row_tile=8 -> cdiv grid with a masked tail block.
    x2 = jax.random.normal(jax.random.PRNGKey(1), (2, 13, features), dtype=jnp.float32)
    out2 = jax.block_until_ready(layer_norm_pallas(x2, alpha, bias, eps=1e-6, row_tile=8))
    ref2 = layer_norm_ref(x2, alpha, bias, eps=1e-6)
    assert jnp.allclose(out2, ref2, atol=1e-5, rtol=1e-5), "ragged-grid mismatch"

    # Already-lane-dense path (groups=1): features=128.
    f3 = 128
    x3 = jax.random.normal(jax.random.PRNGKey(2), (2, 5, f3), dtype=jnp.float32)
    a3 = jnp.ones((f3,), dtype=jnp.float32)
    b3 = jnp.zeros((f3,), dtype=jnp.float32)
    out3 = jax.block_until_ready(layer_norm_pallas(x3, a3, b3, eps=1e-6))
    ref3 = layer_norm_ref(x3, a3, b3, eps=1e-6)
    assert jnp.allclose(out3, ref3, atol=1e-5, rtol=1e-5), "wide-feature mismatch"

    print("KERNEL_OK")
</pallas_src>

<mosaic_0001>
module attributes {stable_mosaic.version = 11 : i64} {
  func.func @_layernorm_kernel(%arg0: i32, %arg1: memref<4x128xf32, #tpu.memory_space<vmem>>, %arg2: memref<1x128xf32, #tpu.memory_space<vmem>>, %arg3: memref<1x128xf32, #tpu.memory_space<vmem>>, %arg4: memref<4x128xf32, #tpu.memory_space<vmem>>) attributes {dimension_semantics = [#tpu.dimension_semantics<parallel>], iteration_bounds = array<i64: 1>, scalar_prefetch = 0 : i64, scratch_operands = 0 : i64, tpu.core_type = #tpu.core_type<tc>, window_params = [{transform_indices = @transform_0, window_bounds = array<i64: 4, 128>}, {pipeline_mode = #tpu.pipeline_mode<synchronous>, transform_indices = @transform_1, window_bounds = array<i64: 1, 128>}, {pipeline_mode = #tpu.pipeline_mode<synchronous>, transform_indices = @transform_2, window_bounds = array<i64: 1, 128>}, {transform_indices = @transform_3, window_bounds = array<i64: 4, 128>}]} {
    %c0 = arith.constant 0 : index
    %c0_0 = arith.constant 0 : index
    %0 = vector.load %arg1[%c0, %c0_0] : memref<4x128xf32, #tpu.memory_space<vmem>>, vector<4x128xf32>
    %1 = vector.extract_strided_slice %0 {offsets = [0, 0], sizes = [4, 32], strides = [1, 1]} : vector<4x128xf32> to vector<4x32xf32>
    %cst = arith.constant dense<0.000000e+00> : vector<4xf32>
    %2 = vector.multi_reduction <add>, %1, %cst [1] : vector<4x32xf32> to vector<4xf32>
    %3 = vector.shape_cast %2 : vector<4xf32> to vector<4x1xf32>
    %cst_1 = arith.constant 3.200000e+01 : f32
    %4 = vector.broadcast %cst_1 : f32 to vector<4x1xf32>
    %5 = arith.divf %3, %4 : vector<4x1xf32>
    %6 = vector.broadcast %5 : vector<4x1xf32> to vector<4x32xf32>
    %7 = arith.subf %1, %6 : vector<4x32xf32>
    %8 = arith.mulf %7, %7 : vector<4x32xf32>
    %cst_2 = arith.constant dense<0.000000e+00> : vector<4xf32>
    %9 = vector.multi_reduction <add>, %8, %cst_2 [1] : vector<4x32xf32> to vector<4xf32>
    %10 = vector.shape_cast %9 : vector<4xf32> to vector<4x1xf32>
    %cst_3 = arith.constant 0.0322580636 : f32
    %11 = vector.broadcast %cst_3 : f32 to vector<4x1xf32>
    %12 = arith.mulf %10, %11 : vector<4x1xf32>
    %13 = math.sqrt %12 : vector<4x1xf32>
    %cst_4 = arith.constant 9.99999997E-7 : f32
    %14 = vector.broadcast %cst_4 : f32 to vector<4x1xf32>
    %15 = arith.addf %13, %14 : vector<4x1xf32>
    %16 = tpu.reciprocal %15 : vector<4x1xf32> -> vector<4x1xf32>
    %17 = vector.broadcast %16 : vector<4x1xf32> to vector<4x32xf32>
    %18 = arith.mulf %7, %17 : vector<4x32xf32>
    %19 = vector.extract_strided_slice %0 {offsets = [0, 32], sizes = [4, 32], strides = [1, 1]} : vector<4x128xf32> to vector<4x32xf32>
    %cst_5 = arith.constant dense<0.000000e+00> : vector<4xf32>
    %20 = vector.multi_reduction <add>, %19, %cst_5 [1] : vector<4x32xf32> to vector<4xf32>
    %21 = vector.shape_cast %20 : vector<4xf32> to vector<4x1xf32>
    %cst_6 = arith.constant 3.200000e+01 : f32
    %22 = vector.broadcast %cst_6 : f32 to vector<4x1xf32>
    %23 = arith.divf %21, %22 : vector<4x1xf32>
    %24 = vector.broadcast %23 : vector<4x1xf32> to vector<4x32xf32>
    %25 = arith.subf %19, %24 : vector<4x32xf32>
    %26 = arith.mulf %25, %25 : vector<4x32xf32>
    %cst_7 = arith.constant dense<0.000000e+00> : vector<4xf32>
    %27 = vector.multi_reduction <add>, %26, %cst_7 [1] : vector<4x32xf32> to vector<4xf32>
    %28 = vector.shape_cast %27 : vector<4xf32> to vector<4x1xf32>
    %cst_8 = arith.constant 0.0322580636 : f32
    %29 = vector.broadcast %cst_8 : f32 to vector<4x1xf32>
    %30 = arith.mulf %28, %29 : vector<4x1xf32>
    %31 = math.sqrt %30 : vector<4x1xf32>
    %cst_9 = arith.constant 9.99999997E-7 : f32
    %32 = vector.broadcast %cst_9 : f32 to vector<4x1xf32>
    %33 = arith.addf %31, %32 : vector<4x1xf32>
    %34 = tpu.reciprocal %33 : vector<4x1xf32> -> vector<4x1xf32>
    %35 = vector.broadcast %34 : vector<4x1xf32> to vector<4x32xf32>
    %36 = arith.mulf %25, %35 : vector<4x32xf32>
    %37 = vector.extract_strided_slice %0 {offsets = [0, 64], sizes = [4, 32], strides = [1, 1]} : vector<4x128xf32> to vector<4x32xf32>
    %cst_10 = arith.constant dense<0.000000e+00> : vector<4xf32>
    %38 = vector.multi_reduction <add>, %37, %cst_10 [1] : vector<4x32xf32> to vector<4xf32>
    %39 = vector.shape_cast %38 : vector<4xf32> to vector<4x1xf32>
    %cst_11 = arith.constant 3.200000e+01 : f32
    %40 = vector.broadcast %cst_11 : f32 to vector<4x1xf32>
    %41 = arith.divf %39, %40 : vector<4x1xf32>
    %42 = vector.broadcast %41 : vector<4x1xf32> to vector<4x32xf32>
    %43 = arith.subf %37, %42 : vector<4x32xf32>
    %44 = arith.mulf %43, %43 : vector<4x32xf32>
    %cst_12 = arith.constant dense<0.000000e+00> : vector<4xf32>
    %45 = vector.multi_reduction <add>, %44, %cst_12 [1] : vector<4x32xf32> to vector<4xf32>
    %46 = vector.shape_cast %45 : vector<4xf32> to vector<4x1xf32>
    %cst_13 = arith.constant 0.0322580636 : f32
    %47 = vector.broadcast %cst_13 : f32 to vector<4x1xf32>
    %48 = arith.mulf %46, %47 : vector<4x1xf32>
    %49 = math.sqrt %48 : vector<4x1xf32>
    %cst_14 = arith.constant 9.99999997E-7 : f32
    %50 = vector.broadcast %cst_14 : f32 to vector<4x1xf32>
    %51 = arith.addf %49, %50 : vector<4x1xf32>
    %52 = tpu.reciprocal %51 : vector<4x1xf32> -> vector<4x1xf32>
    %53 = vector.broadcast %52 : vector<4x1xf32> to vector<4x32xf32>
    %54 = arith.mulf %43, %53 : vector<4x32xf32>
    %55 = vector.extract_strided_slice %0 {offsets = [0, 96], sizes = [4, 32], strides = [1, 1]} : vector<4x128xf32> to vector<4x32xf32>
    %cst_15 = arith.constant dense<0.000000e+00> : vector<4xf32>
    %56 = vector.multi_reduction <add>, %55, %cst_15 [1] : vector<4x32xf32> to vector<4xf32>
    %57 = vector.shape_cast %56 : vector<4xf32> to vector<4x1xf32>
    %cst_16 = arith.constant 3.200000e+01 : f32
    %58 = vector.broadcast %cst_16 : f32 to vector<4x1xf32>
    %59 = arith.divf %57, %58 : vector<4x1xf32>
    %60 = vector.broadcast %59 : vector<4x1xf32> to vector<4x32xf32>
    %61 = arith.subf %55, %60 : vector<4x32xf32>
    %62 = arith.mulf %61, %61 : vector<4x32xf32>
    %cst_17 = arith.constant dense<0.000000e+00> : vector<4xf32>
    %63 = vector.multi_reduction <add>, %62, %cst_17 [1] : vector<4x32xf32> to vector<4xf32>
    %64 = vector.shape_cast %63 : vector<4xf32> to vector<4x1xf32>
    %cst_18 = arith.constant 0.0322580636 : f32
    %65 = vector.broadcast %cst_18 : f32 to vector<4x1xf32>
    %66 = arith.mulf %64, %65 : vector<4x1xf32>
    %67 = math.sqrt %66 : vector<4x1xf32>
    %cst_19 = arith.constant 9.99999997E-7 : f32
    %68 = vector.broadcast %cst_19 : f32 to vector<4x1xf32>
    %69 = arith.addf %67, %68 : vector<4x1xf32>
    %70 = tpu.reciprocal %69 : vector<4x1xf32> -> vector<4x1xf32>
    %71 = vector.broadcast %70 : vector<4x1xf32> to vector<4x32xf32>
    %72 = arith.mulf %61, %71 : vector<4x32xf32>
    %73 = tpu.concatenate %18, %36, %54, %72 in 1 : vector<4x32xf32>, vector<4x32xf32>, vector<4x32xf32>, vector<4x32xf32> -> vector<4x128xf32>
    %c0_20 = arith.constant 0 : index
    %c0_21 = arith.constant 0 : index
    %74 = vector.load %arg2[%c0_20, %c0_21] : memref<1x128xf32, #tpu.memory_space<vmem>>, vector<1x128xf32>
    %75 = vector.broadcast %74 : vector<1x128xf32> to vector<4x128xf32>
    %76 = arith.mulf %75, %73 : vector<4x128xf32>
    %c0_22 = arith.constant 0 : index
    %c0_23 = arith.constant 0 : index
    %77 = vector.load %arg3[%c0_22, %c0_23] : memref<1x128xf32, #tpu.memory_space<vmem>>, vector<1x128xf32>
    %78 = vector.broadcast %77 : vector<1x128xf32> to vector<4x128xf32>
    %79 = arith.addf %76, %78 : vector<4x128xf32>
    %c0_24 = arith.constant 0 : index
    %c0_25 = arith.constant 0 : index
    %80 = vector.load %arg4[%c0_24, %c0_25] : memref<4x128xf32, #tpu.memory_space<vmem>>, vector<4x128xf32>
    tpu.vector_store %arg4[%c0_24, %c0_25], %79 {strides = array<i32>} : memref<4x128xf32, #tpu.memory_space<vmem>>, vector<4x128xf32>,
    return
  }
  func.func @transform_0(%arg0: i32) -> (i32, i32) {
    %c0_i32 = arith.constant 0 : i32
    %c0_i32_0 = arith.constant 0 : i32
    return %arg0, %c0_i32 : i32, i32
  }
  func.func @transform_1(%arg0: i32) -> (i32, i32) {
    %c0_i32 = arith.constant 0 : i32
    %c0_i32_0 = arith.constant 0 : i32
    %c0_i32_1 = arith.constant 0 : i32
    return %c0_i32, %c0_i32_0 : i32, i32
  }
  func.func @transform_2(%arg0: i32) -> (i32, i32) {
    %c0_i32 = arith.constant 0 : i32
    %c0_i32_0 = arith.constant 0 : i32
    %c0_i32_1 = arith.constant 0 : i32
    return %c0_i32, %c0_i32_0 : i32, i32
  }
  func.func @transform_3(%arg0: i32) -> (i32, i32) {
    %c0_i32 = arith.constant 0 : i32
    %c0_i32_0 = arith.constant 0 : i32
    return %arg0, %c0_i32 : i32, i32
  }
}

</mosaic_0001>

<bundles_post_ra>
// kernel: tpu_custom_call.1
= control target key start
LH: loop header
LB: loop body
LE: loop exit
PB: predicated region body
PF: predicated region fallthrough
CT: control target
= control target key end

     0   :  { %8 = vsyncpa [#allocation3], 0  ;;  %s466_s0 = inlined_call_operand.hbm [shape: f32[4,128], index: 0, kind: input, shape index: {}]   ;;  %s467_s1 = inlined_call_operand.hbm [shape: f32[1,128], index: 1, kind: input, shape index: {}]   ;;  %s468_s2 = inlined_call_operand.vmem [shape: f32[1,128], index: 2, kind: input, shape index: {}]   ;;  %s469_s3 = inlined_call_operand.hbm [shape: f32[4,128], index: 3, kind: output, shape index: {}]  }
   0x1   :  { %9 = vsyncpa [#allocation6], 0 }
   0x2   :  { %10 = vsyncpa [#allocation4], 0  ;;  %s16_s14 = sshll.u32 %s466_s0, 4  ;;  %s366_s15 = smov [#allocation2]   ;;  %s17_s14 = int_to_ptr.hbm [resolvable:$true] %s16_s14 }
   0x3   :  { %s18_s16 = sshll.u32 %s366_s15, 4  ;;  %s27_s19 = sshll.u32 %s467_s1, 4  ;;  %s19_s16 = int_to_ptr.vmem [resolvable:$true] %s18_s16  ;;  %s28_s19 = int_to_ptr.hbm [resolvable:$true] %s27_s19 }
   0x4   :  { %21 = dma.hbm_to_vmem [thread:$0]  %s17_s14, 64, %s19_s16, [#allocation3]  }
   0x5   :  { %s367_s20 = smov [#allocation5]  }
   0x6   :  { %s29_s21 = sshll.u32 %s367_s20, 4  ;;  %s30_s21 = int_to_ptr.vmem [resolvable:$true] %s29_s21 }
   0x7   :  { %32 = dma.hbm_to_vmem [thread:$0]  %s28_s19, 16, %s30_s21, [#allocation6]  }
   0x8   :  { %360 = dma.done.wait [#allocation3], 64  }
   0x9   :  { %361 = vsyncadd [#allocation3], 4294967232 }
   0xa   :  { %362 = dma.done.wait [#allocation6], 16  }
   0xb   :  { %363 = vsyncadd [#allocation6], 4294967280  ;;  %v43_v0 = vld [vmem:[#allocation2] sm:$0xf]  ;;  %s368_s0 = smov 96   ;;  %s369_s22 = smov 32  }
   0xc   :  { %91 = vrot.lane.b32.xlu0 %v43_v0, %s368_s0  ;;  %181 = vrot.lane.b32.xlu1 %v43_v0, %s369_s22  ;;  %s370_s23 = smov 64   ;;  %vm44_vm0 = vcmask 257024   ;;  %v371_v8 = vmov 32.0   ;;  %s372_s25 = smov [#allocation7]  }
   0xd   :  { %v45_v1 = vsel %vm44_vm0, %v43_v0, 0.0  ;;  %270 = vrcp.f32 %v371_v8  ;;  %s248_s26 = sshll.u32 %s372_s25, 4  ;;  %s250_s29 = sshll.u32 %s469_s3, 4  ;;  %s249_s26 = int_to_ptr.vmem [resolvable:$true] %s248_s26  ;;  %s251_s29 = int_to_ptr.hbm [resolvable:$true] %s250_s29 }
  0x13   :  { %v271_v9 = vpop.eup %270 }
  0x14   :  { %136 = vrot.lane.b32.xlu0 %v43_v0, %s370_s23  ;;  %v49_v10 = vmul.f32 32.0, %v271_v9  ;;  %vm53_vm1 = vweird.f32 %v271_v9 }
  0x16   :  { %v50_v11 = vsub.f32 1.0, %v49_v10 }
  0x18   :  { %v51_v12 = vmul.f32 %v271_v9, %v50_v11 }
  0x1a   :  { %v52_v13 = vadd.f32 %v271_v9, %v51_v12 }
  0x1c   :  { %v54_v14 = vsel %vm53_vm1, %v271_v9, %v52_v13 }
  0x3e   :  { %46 = vadd.xlane.f32.xlu0 %v45_v1 }
  0x7e   :  { %v92_v2 = vpop.permute.xlu0 %91  ;;  %v182_v6 = vpop.permute.xlu1 %181 }
  0x7f   :  { %v94_v3 = vsel %vm44_vm0, %v92_v2, 0.0  ;;  %v184_v7 = vsel %vm44_vm0, %v182_v6, 0.0 }
  0x80   :  { %95 = vadd.xlane.f32.xlu1 %v94_v3 }
  0x86   :  { %v137_v4 = vpop.permute.xlu0 %136 }
  0x87   :  { %v139_v5 = vsel %vm44_vm0, %v137_v4, 0.0 }
  0x88   :  { %140 = vadd.xlane.f32.xlu2 %v139_v5 }
  0x90   :  { %185 = vadd.xlane.f32.xlu2 %v184_v7 }
  0xb1   :  { %v47_v15 = vpop.xlane.xlu0 %46 }
  0xb2   :  { %v55_v16 = vmul.f32 %v54_v14, %v47_v15 }
  0xb4   :  { %v406_v17 = vsub.f32 %v43_v0, %v55_v16 }
  0xb6   :  { %v57_v18 = vmul.f32 %v406_v17, %v406_v17 }
  0xb8   :  { %v58_v19 = vsel %vm44_vm0, %v57_v18, 0.0 }
  0xb9   :  { %59 = vadd.xlane.f32.xlu1 %v58_v19 }
  0xf3   :  { %v96_v20 = vpop.xlane.xlu1 %95 }
  0xf4   :  { %v97_v21 = vmul.f32 %v96_v20, %v54_v14 }
  0xf6   :  { %v411_v22 = vsub.f32 %v43_v0, %v97_v21 }
  0xf8   :  { %v99_v23 = vmul.f32 %v411_v22, %v411_v22 }
  0xfa   :  { %101 = vrot.lane.b32.xlu2 %v99_v23, %s368_s0 }
  0xfb   :  { %v141_v24 = vpop.xlane.xlu2 %140 }
  0xfc   :  { %v142_v25 = vmul.f32 %v141_v24, %v54_v14 }
  0xfe   :  { %v416_v26 = vsub.f32 %v43_v0, %v142_v25 }
 0x100   :  { %v144_v27 = vmul.f32 %v416_v26, %v416_v26 }
 0x102   :  { %146 = vrot.lane.b32.xlu2 %v144_v27, %s370_s23 }
 0x103   :  { %v186_v28 = vpop.xlane.xlu2 %185 }
 0x104   :  { %v187_v29 = vmul.f32 %v186_v28, %v54_v14 }
 0x106   :  { %v421_v30 = vsub.f32 %v43_v0, %v187_v29 }
 0x108   :  { %v189_v31 = vmul.f32 %v421_v30, %v421_v30 }
 0x10a   :  { %191 = vrot.lane.b32.xlu2 %v189_v31, %s369_s22 }
 0x12c   :  { %v60_v38 = vpop.xlane.xlu1 %59 }
 0x12d   :  { %v61_v39 = vmul.f32 0.032258064, %v60_v38 }
 0x12f   :  { %272 = vrsqrt.f32 %v61_v39  ;;  %vm69_vm2 = vcmp.eq.f32.partialorder %v61_v39, inf  ;;  %v72_v54 = vand.u32 2147483648, %v61_v39  ;;  %vm71_vm3 = vcmp.eq.f32.partialorder %v61_v39, 0.0 }
 0x135   :  { %v273_v40 = vpop.eup %272 }
 0x136   :  { %v63_v41 = vmul.f32 %v273_v40, %v61_v39 }
 0x138   :  { %v64_v42 = vmul.f32 %v273_v40, %v63_v41 }
 0x13a   :  { %v65_v43 = vmul.f32 0.5, %v64_v42 }
 0x13c   :  { %v66_v46 = vsub.f32 1.5, %v65_v43 }
 0x13e   :  { %v67_v47 = vmul.f32 %v273_v40, %v66_v46 }
 0x140   :  { %v68_v52 = vmul.f32 %v67_v47, %v61_v39 }
 0x142   :  { %v70_v56 = vsel %vm69_vm2, %v61_v39, %v68_v52 }
 0x143   :  { %v73_v61 = vsel %vm71_vm3, %v72_v54, %v70_v56 }
 0x144   :  { %v429_v2 = vadd.f32 1e-06, %v73_v61 }
 0x146   :  { %vm80_vm10 = vweird.f32 %v429_v2  ;;  %v84_v41 = vand.u32 2147483647, %v429_v2 }
 0x148   :  { %vm85_vm3 = vcmp.eq.f32.partialorder %v84_v41, 8.507059e+37 }
 0x154   :  { %v102_v32 = vpop.permute.xlu2 %101 }
 0x155   :  { %v104_v33 = vsel %vm44_vm0, %v102_v32, 0.0 }
 0x156   :  { %105 = vadd.xlane.f32.xlu2 %v104_v33 }
 0x15c   :  { %v147_v34 = vpop.permute.xlu2 %146 }
 0x15d   :  { %v149_v35 = vsel %vm44_vm0, %v147_v34, 0.0 }
 0x15e   :  { %150 = vadd.xlane.f32.xlu0 %v149_v35 }
 0x164   :  { %v192_v36 = vpop.permute.xlu2 %191 }
 0x165   :  { %v194_v37 = vsel %vm44_vm0, %v192_v36, 0.0 }
 0x166   :  { %195 = vadd.xlane.f32.xlu1 %v194_v37 }
 0x1c9   :  { %v106_v44 = vpop.xlane.xlu2 %105 }
 0x1ca   :  { %v107_v45 = vmul.f32 0.032258064, %v106_v44 }
 0x1cc   :  { %274 = vrsqrt.f32 %v107_v45  ;;  %vm115_vm4 = vcmp.eq.f32.partialorder %v107_v45, inf  ;;  %v118_v3 = vand.u32 2147483648, %v107_v45  ;;  %vm117_vm5 = vcmp.eq.f32.partialorder %v107_v45, 0.0 }
 0x1d1   :  { %v151_v48 = vpop.xlane.xlu0 %150 }
 0x1d2   :  { %v275_v49 = vpop.eup %274  ;;  %v152_v50 = vmul.f32 0.032258064, %v151_v48 }
 0x1d3   :  { %v109_v51 = vmul.f32 %v275_v49, %v107_v45 }
 0x1d4   :  { %276 = vrsqrt.f32 %v152_v50  ;;  %vm160_vm6 = vcmp.eq.f32.partialorder %v152_v50, inf  ;;  %v163_v14 = vand.u32 2147483648, %v152_v50  ;;  %vm162_vm7 = vcmp.eq.f32.partialorder %v152_v50, 0.0 }
 0x1d5   :  { %v110_v53 = vmul.f32 %v275_v49, %v109_v51 }
 0x1d7   :  { %v111_v55 = vmul.f32 0.5, %v110_v53 }
 0x1d9   :  { %v112_v57 = vsub.f32 1.5, %v111_v55  ;;  %v196_v58 = vpop.xlane.xlu1 %195 }
 0x1da   :  { %v277_v59 = vpop.eup %276  ;;  %v197_v60 = vmul.f32 0.032258064, %v196_v58 }
 0x1db   :  { %v113_v62 = vmul.f32 %v275_v49, %v112_v57  ;;  %v154_v63 = vmul.f32 %v277_v59, %v152_v50 }
 0x1dc   :  { %278 = vrsqrt.f32 %v197_v60  ;;  %vm205_vm8 = vcmp.eq.f32.partialorder %v197_v60, inf  ;;  %v208_v29 = vand.u32 2147483648, %v197_v60  ;;  %vm207_vm9 = vcmp.eq.f32.partialorder %v197_v60, 0.0 }
 0x1dd   :  { %v114_v0 = vmul.f32 %v113_v62, %v107_v45  ;;  %v155_v1 = vmul.f32 %v277_v59, %v154_v63  ;;  %280 = vrcp.f32 %v429_v2 }
 0x1df   :  { %v116_v4 = vsel %vm115_vm4, %v107_v45, %v114_v0  ;;  %v156_v5 = vmul.f32 0.5, %v155_v1  ;;  %v86_v45 = vand.u32 2147483648, %v429_v2 }
 0x1e0   :  { %v119_v6 = vsel %vm117_vm5, %v118_v3, %v116_v4 }
 0x1e1   :  { %v431_v7 = vadd.f32 1e-06, %v119_v6  ;;  %v157_v8 = vsub.f32 1.5, %v156_v5  ;;  %v87_v55 = vor.u32 1.1754944e-38, %v86_v45 }
 0x1e2   :  { %v279_v9 = vpop.eup %278 }
 0x1e3   :  { %282 = vrcp.f32 %v431_v7  ;;  %v158_v10 = vmul.f32 %v277_v59, %v157_v8  ;;  %v199_v11 = vmul.f32 %v279_v9, %v197_v60  ;;  %v435_v18 = vpop.eup %280  ;;  %v132_v46 = vand.u32 2147483648, %v431_v7 }
 0x1e4   :  { %v76_v27 = vmul.f32 %v435_v18, %v429_v2  ;;  %vm81_vm11 = vweird.f32 %v435_v18  ;;  %vm126_vm15 = vweird.f32 %v431_v7  ;;  %v130_v48 = vand.u32 2147483647, %v431_v7 }
 0x1e5   :  { %v159_v12 = vmul.f32 %v158_v10, %v152_v50  ;;  %v200_v13 = vmul.f32 %v279_v9, %v199_v11  ;;  %vm447_vm14 = vmor %vm80_vm10, %vm81_vm11  ;;  %v133_v56 = vor.u32 1.1754944e-38, %v132_v46  ;;  %vm228_vm11 = vcmask 523264   ;;  %v268_v10 = vld [vmem:[#allocation5] ss:$0 sm:$0xff] }
 0x1e6   :  { %v77_v33 = vsub.f32 1.0, %v76_v27  ;;  %vm131_vm4 = vcmp.eq.f32.partialorder %v130_v48, 8.507059e+37 }
 0x1e7   :  { %v161_v15 = vsel %vm160_vm6, %v152_v50, %v159_v12  ;;  %v201_v16 = vmul.f32 0.5, %v200_v13 }
 0x1e8   :  { %v164_v19 = vsel %vm162_vm7, %v163_v14, %v161_v15  ;;  %v78_v39 = vmul.f32 %v435_v18, %v77_v33 }
 0x1e9   :  { %v283_v20 = vpop.eup %282  ;;  %v165_v21 = vadd.f32 1e-06, %v164_v19  ;;  %v202_v23 = vsub.f32 1.5, %v201_v16 }
 0x1ea   :  { %v122_v24 = vmul.f32 %v283_v20, %v431_v7  ;;  %vm127_vm12 = vweird.f32 %v283_v20  ;;  %v79_v44 = vadd.f32 %v435_v18, %v78_v39 }
 0x1eb   :  { %284 = vrcp.f32 %v165_v21  ;;  %v203_v25 = vmul.f32 %v279_v9, %v202_v23  ;;  %v177_v50 = vand.u32 2147483648, %v165_v21  ;;  %vm128_vm0 = vmor %vm126_vm15, %vm127_vm12  ;;  %vm171_vm1 = vweird.f32 %v165_v21 }
 0x1ec   :  { %v123_v31 = vsub.f32 1.0, %v122_v24  ;;  %v175_v52 = vand.u32 2147483647, %v165_v21  ;;  %v83_v58 = vsel %vm447_vm14, %v435_v18, %v79_v44  ;;  %vm230_vm12 = vcmask 785408  }
 0x1ed   :  { %v204_v28 = vmul.f32 %v203_v25, %v197_v60  ;;  %v178_v59 = vor.u32 1.1754944e-38, %v177_v50  ;;  %v88_v2 = vsel %vm85_vm3, %v87_v55, %v83_v58 }
 0x1ee   :  { %v124_v37 = vmul.f32 %v283_v20, %v123_v31  ;;  %vm176_vm5 = vcmp.eq.f32.partialorder %v175_v52, 8.507059e+37  ;;  %v89_v7 = vmul.f32 %v88_v2, %v406_v17 }
 0x1ef   :  { %v206_v32 = vsel %vm205_vm8, %v197_v60, %v204_v28 }
 0x1f0   :  { %v209_v34 = vsel %vm207_vm9, %v208_v29, %v206_v32  ;;  %v125_v42 = vadd.f32 %v283_v20, %v124_v37  ;;  %vm226_vm9 = vcmask 261120  }
 0x1f1   :  { %v285_v35 = vpop.eup %284  ;;  %v210_v36 = vadd.f32 1e-06, %v209_v34 }
 0x1f2   :  { %v167_v38 = vmul.f32 %v285_v35, %v165_v21  ;;  %vm172_vm13 = vweird.f32 %v285_v35  ;;  %v129_v53 = vsel %vm128_vm0, %v283_v20, %v125_v42 }
 0x1f3   :  { %286 = vrcp.f32 %v210_v36  ;;  %vm173_vm2 = vmor %vm171_vm1, %vm172_vm13  ;;  %v134_v61 = vsel %vm131_vm4, %v133_v56, %v129_v53  ;;  %v222_v62 = vand.u32 2147483648, %v210_v36  ;;  %v220_v1 = vand.u32 2147483647, %v210_v36 }
 0x1f4   :  { %v168_v40 = vsub.f32 1.0, %v167_v38  ;;  %v135_v3 = vmul.f32 %v134_v61, %v411_v22  ;;  %vm216_vm7 = vweird.f32 %v210_v36  ;;  %v269_v22 = vld [vmem:[%s468_s2] ss:$0 sm:$0xff] }
 0x1f5   :  { %v223_v6 = vor.u32 1.1754944e-38, %v222_v62  ;;  %vm221_vm10 = vcmp.eq.f32.partialorder %v220_v1, 8.507059e+37 }
 0x1f6   :  { %v169_v43 = vmul.f32 %v285_v35, %v168_v40  ;;  %v227_v12 = vsel %vm226_vm9, %v89_v7, %v135_v3 }
 0x1f8   :  { %v170_v49 = vadd.f32 %v285_v35, %v169_v43 }
 0x1f9   :  { %v287_v51 = vpop.eup %286 }
 0x1fa   :  { %v212_v54 = vmul.f32 %v287_v51, %v210_v36  ;;  %v174_v57 = vsel %vm173_vm2, %v285_v35, %v170_v49  ;;  %vm217_vm6 = vweird.f32 %v287_v51 }
 0x1fb   :  { %v179_v63 = vsel %vm176_vm5, %v178_v59, %v174_v57  ;;  %vm218_vm8 = vmor %vm216_vm7, %vm217_vm6 }
 0x1fc   :  { %v213_v60 = vsub.f32 1.0, %v212_v54  ;;  %v180_v5 = vmul.f32 %v179_v63, %v416_v26 }
 0x1fe   :  { %v214_v0 = vmul.f32 %v287_v51, %v213_v60  ;;  %v229_v13 = vsel %vm228_vm11, %v227_v12, %v180_v5 }
 0x200   :  { %v215_v4 = vadd.f32 %v287_v51, %v214_v0 }
 0x202   :  { %v219_v8 = vsel %vm218_vm8, %v287_v51, %v215_v4 }
 0x203   :  { %v224_v9 = vsel %vm221_vm10, %v223_v6, %v219_v8 }
 0x204   :  { %v225_v11 = vmul.f32 %v224_v9, %v421_v30 }
 0x206   :  { %v231_v26 = vsel %vm230_vm12, %v229_v13, %v225_v11 }
 0x207   :  { %v236_v17 = vmul.f32 %v268_v10, %v231_v26 }
 0x209   :  { %v241_v14 = vadd.f32 %v269_v22, %v236_v17 }
 0x20b   :  { %242 = vst [vmem:[#allocation7] sm:$0xf] %v241_v14 }
 0x20c   :  { %253 = dma.vmem_to_hbm [thread:$0]  %s249_s26, 64, %s251_s29, [#allocation4]  }
 0x20d   :  { %364 = dma.done.wait [#allocation4], 64  }
 0x20e   :  { %365 = vsyncadd [#allocation4], 4294967232 }
 0x20f   :  { %258 = vsyncpa [#allocation3], 1 }
 0x210   :  { %259 = vsyncpa [#allocation6], 1 }
 0x211   :  { %260 = vsyncpa [#allocation4], 1 }

</bundles_post_ra>
